<compile_context>
chip_gen: v6e
topology: v6e:2x2x1
jax: 0.10.0
libtpu: 0.0.40
codegen_flags: <defaults>
</compile_context>

<pallas_src>
import math
import jax
import jax.numpy as jnp
from jax.experimental import pallas as pl
from jax.experimental.pallas import tpu as pltpu

LANE = 128


# ----------------------------- helpers --------------------------------------

def _round_up(x, m):
    return ((x + m - 1) // m) * m


def _pad2(a, rows, cols):
    r, c = a.shape
    if r == rows and c == cols:
        return a
    return jnp.pad(a, ((0, rows - r), (0, cols - c)))


def _vmem_budget_bytes():
    """~85% of this generation's physical VMEM; conservative fallback if query fails."""
    try:
        return int(0.85 * pltpu.get_tpu_info().vmem_capacity_bytes)
    except Exception:
        return 64 << 20


def _pick_batch_tile(B, batch_tile):
    """Multiple-of-16 batch tile; >=2 grid steps when B allows (v7x megacore)."""
    if B >= 2 * batch_tile:
        return batch_tile
    if B >= 32:
        return min(batch_tile, _round_up((B + 1) // 2, 16))
    # Tiny batch: one full-batch block (legal: block dim equals the full array dim).
    return B


# ----------------------------- fused kernel ---------------------------------

def _make_fused_decoder_kernel(num_layers):
    """LeakyReLU(...(LeakyReLU(LeakyReLU(x@W0+b0)@W1+b1))...@Wn+bn), fully fused."""

    def kernel(*refs):
        # refs = [x, w0, b0, w1, b1, ..., wN, bN, o]
        x_ref = refs[0]
        o_ref = refs[1 + 2 * num_layers]

        h = x_ref[...]                                   # already bf16
        for l in range(num_layers):                      # static unrolled layer loop
            w_ref = refs[1 + 2 * l]
            b_ref = refs[2 + 2 * l]
            y = jnp.dot(h, w_ref[...], preferred_element_type=jnp.float32)
            y = y + b_ref[...]                           # f32 bias broadcast
            y = jnp.maximum(y, 0.2 * y)                  # LeakyReLU(0.2), exact
            if l == num_layers - 1:
                o_ref[...] = y.astype(o_ref.dtype)
            else:
                h = y.astype(jnp.bfloat16)               # value-carried, no scratch

    return kernel


# ----------------------------- wrapper ---------------------------------------

def decoder_old_forward(params, z, *, batch_tile=512):
    """Pallas implementation of Decoder_old.forward (type='straight').

    z: [B, latent_dim] float32.  Returns [B, output_dim] float32.
    """
    layers = [params["layer_in"]] + list(params["hidden"]) + [params["layer_out"]]
    num_layers = len(layers)

    B, latent_dim = z.shape
    hidden_dim = layers[0][0].shape[1]
    output_dim = layers[-1][0].shape[1]

    # Only the internal hidden width gets lane-padded (zero padding keeps the
    # padded activation lanes exactly 0 through every layer).  Input / output
    # widths stay at their true sizes -> no wrapper-side pad / slice copies.
    hidden_p = _round_up(hidden_dim, LANE)
    in_dims = [latent_dim] + [hidden_p] * (num_layers - 1)
    out_dims = [hidden_p] * (num_layers - 1) + [output_dim]

    # bf16 input: halves x HBM->VMEM DMA and removes an in-kernel convert.
    z_bf16 = z.astype(jnp.bfloat16)

    # Parameters (in a real model: pre-pad/cast once outside the step fn).
    padded_args = []
    param_bytes = 0
    for (w, b), kp, np_ in zip(layers, in_dims, out_dims):
        w_p = _pad2(w, kp, np_).astype(jnp.bfloat16)            # bf16 weights on MXU
        b_p = _pad2(b.reshape(1, -1), 1, np_).astype(jnp.float32)
        padded_args += [w_p, b_p]
        param_bytes += kp * np_ * 2 + np_ * 4

    budget = _vmem_budget_bytes()

    def vmem_needed(tb):
        act = 2 * tb * latent_dim * 2 + 2 * tb * output_dim * 4   # x / out double buffers
        live = 4 * tb * hidden_p * 4                              # compiler-managed intermediates (estimate)
        return act + live + 2 * param_bytes + (2 << 20)           # params double-buffered + headroom

    TB = _pick_batch_tile(B, batch_tile)
    while TB > 16 and vmem_needed(TB) > budget:
        TB = max(16, _round_up(TB // 2, 16))                      # shrink batch tile to fit
    grid = (pl.cdiv(B, TB),)                                      # ragged last block handled by Pallas

    # BlockSpecs: batch-tiled activations; constant-index (VMEM-resident) params.
    in_specs = [pl.BlockSpec((TB, latent_dim), lambda i: (i, 0))]
    for kp, np_ in zip(in_dims, out_dims):
        in_specs.append(pl.BlockSpec((kp, np_), lambda i: (0, 0)))   # weight
        in_specs.append(pl.BlockSpec((1, np_), lambda i: (0, 0)))    # bias
    out_spec = pl.BlockSpec((TB, output_dim), lambda i: (i, 0))

    # Advisory cost estimate for XLA scheduling around the custom call.
    flops = 2 * B * sum(k * n for k, n in zip(in_dims, out_dims))
    bytes_accessed = B * latent_dim * 2 + param_bytes + B * output_dim * 4
    cost = pl.CostEstimate(flops=flops, transcendentals=0,
                           bytes_accessed=bytes_accessed)

    kernel = _make_fused_decoder_kernel(num_layers)
    out = pl.pallas_call(
        kernel,
        out_shape=jax.ShapeDtypeStruct((B, output_dim), jnp.float32),
        grid=grid,
        in_specs=in_specs,
        out_specs=out_spec,
        compiler_params=pltpu.CompilerParams(
            dimension_semantics=("parallel",),
            vmem_limit_bytes=budget,
        ),
        cost_estimate=cost,
    )(z_bf16, *padded_args)

    return out


# ----------------------------- param init ------------------------------------

def init_linear_params(key, in_dim, out_dim):
    """U(-1/sqrt(fan_in), 1/sqrt(fan_in)) like nn.Linear; W stored [in, out]."""
    kw, kb = jax.random.split(key)
    bound = 1.0 / math.sqrt(in_dim)
    w = jax.random.uniform(kw, (in_dim, out_dim), jnp.float32, -bound, bound)
    b = jax.random.uniform(kb, (1, out_dim), jnp.float32, -bound, bound)
    return w, b


def make_decoder_params(key, latent_dim, hidden_dim, output_dim, nb_hidden=1):
    keys = jax.random.split(key, nb_hidden + 2)
    return {
        "layer_in": init_linear_params(keys[0], latent_dim, hidden_dim),
        "hidden": [
            init_linear_params(keys[1 + i], hidden_dim, hidden_dim)
            for i in range(nb_hidden)
        ],
        "layer_out": init_linear_params(keys[-1], hidden_dim, output_dim),
    }


# ----------------------------- reference (f32 PyTorch semantics) -------------

def ref_forward_f32(params, z):
    """Plain-JAX f32 reference matching the original PyTorch Decoder_old."""
    layers = [params["layer_in"]] + list(params["hidden"]) + [params["layer_out"]]
    h = z
    for w, b in layers:
        h = jnp.dot(h, w) + b
        h = jnp.maximum(h, 0.2 * h)          # LeakyReLU(0.2)
    return h


# ----------------------------- demo / check ----------------------------------

if __name__ == "__main__":
    batch = 2
    latent_dim = 8
    hidden_dim = 32
    output_dim = 16
    nb_hidden = 1

    key = jax.random.PRNGKey(0)
    k_params, k_z = jax.random.split(key)

    params = make_decoder_params(k_params, latent_dim, hidden_dim,
                                 output_dim, nb_hidden=nb_hidden)
    z = jax.random.normal(k_z, (batch, latent_dim), dtype=jnp.float32)

    out = decoder_old_forward(params, z)
    out = jax.block_until_ready(out)

    assert out.shape == (batch, output_dim)
    assert out.dtype == jnp.float32

    ref = ref_forward_f32(params, z)
    # Kernel uses bf16 weights/activations on the MXU with f32 accumulation;
    # tolerance covers the bf16 downcast vs the f32 reference.
    assert jnp.allclose(out, ref, atol=2e-2, rtol=2e-2), (out, ref)

    print("KERNEL_OK")
</pallas_src>

<mosaic_0001>
module attributes {stable_mosaic.version = 11 : i64} {
  func.func @kernel(%arg0: i32, %arg1: memref<2x8xbf16, #tpu.memory_space<vmem>>, %arg2: memref<8x128xbf16, #tpu.memory_space<vmem>>, %arg3: memref<1x128xf32, #tpu.memory_space<vmem>>, %arg4: memref<128x128xbf16, #tpu.memory_space<vmem>>, %arg5: memref<1x128xf32, #tpu.memory_space<vmem>>, %arg6: memref<128x16xbf16, #tpu.memory_space<vmem>>, %arg7: memref<1x16xf32, #tpu.memory_space<vmem>>, %arg8: memref<2x16xf32, #tpu.memory_space<vmem>>) attributes {dimension_semantics = [#tpu.dimension_semantics<parallel>], iteration_bounds = array<i64: 1>, scalar_prefetch = 0 : i64, scratch_operands = 0 : i64, tpu.core_type = #tpu.core_type<tc>, window_params = [{transform_indices = @transform_0, window_bounds = array<i64: 2, 8>}, {pipeline_mode = #tpu.pipeline_mode<synchronous>, transform_indices = @transform_1, window_bounds = array<i64: 8, 128>}, {pipeline_mode = #tpu.pipeline_mode<synchronous>, transform_indices = @transform_2, window_bounds = array<i64: 1, 128>}, {pipeline_mode = #tpu.pipeline_mode<synchronous>, transform_indices = @transform_3, window_bounds = array<i64: 128, 128>}, {pipeline_mode = #tpu.pipeline_mode<synchronous>, transform_indices = @transform_4, window_bounds = array<i64: 1, 128>}, {pipeline_mode = #tpu.pipeline_mode<synchronous>, transform_indices = @transform_5, window_bounds = array<i64: 128, 16>}, {pipeline_mode = #tpu.pipeline_mode<synchronous>, transform_indices = @transform_6, window_bounds = array<i64: 1, 16>}, {transform_indices = @transform_7, window_bounds = array<i64: 2, 16>}]} {
    %c0 = arith.constant 0 : index
    %c0_0 = arith.constant 0 : index
    %0 = vector.load %arg1[%c0, %c0_0] : memref<2x8xbf16, #tpu.memory_space<vmem>>, vector<2x8xbf16>
    %c0_1 = arith.constant 0 : index
    %c0_2 = arith.constant 0 : index
    %1 = vector.load %arg2[%c0_1, %c0_2] : memref<8x128xbf16, #tpu.memory_space<vmem>>, vector<8x128xbf16>
    %cst = arith.constant dense<0.000000e+00> : vector<2x128xf32>
    %2 = tpu.matmul %0, %1, %cst {dimension_numbers = #tpu.dot_dimension_numbers<[1], [0], [0], [1], [0, 0, 1, 1], [], []>} : vector<2x8xbf16>, vector<8x128xbf16>, vector<2x128xf32> -> vector<2x128xf32>
    %c0_3 = arith.constant 0 : index
    %c0_4 = arith.constant 0 : index
    %3 = vector.load %arg3[%c0_3, %c0_4] : memref<1x128xf32, #tpu.memory_space<vmem>>, vector<1x128xf32>
    %4 = vector.broadcast %3 : vector<1x128xf32> to vector<2x128xf32>
    %5 = arith.addf %2, %4 : vector<2x128xf32>
    %cst_5 = arith.constant 2.000000e-01 : f32
    %6 = vector.broadcast %cst_5 : f32 to vector<2x128xf32>
    %7 = arith.mulf %6, %5 : vector<2x128xf32>
    %8 = arith.maximumf %5, %7 : vector<2x128xf32>
    %9 = arith.truncf %8 : vector<2x128xf32> to vector<2x128xbf16>
    %c0_6 = arith.constant 0 : index
    %c0_7 = arith.constant 0 : index
    %10 = vector.load %arg4[%c0_6, %c0_7] : memref<128x128xbf16, #tpu.memory_space<vmem>>, vector<128x128xbf16>
    %cst_8 = arith.constant dense<0.000000e+00> : vector<2x128xf32>
    %11 = tpu.matmul %9, %10, %cst_8 {dimension_numbers = #tpu.dot_dimension_numbers<[1], [0], [0], [1], [0, 0, 1, 1], [], []>} : vector<2x128xbf16>, vector<128x128xbf16>, vector<2x128xf32> -> vector<2x128xf32>
    %c0_9 = arith.constant 0 : index
    %c0_10 = arith.constant 0 : index
    %12 = vector.load %arg5[%c0_9, %c0_10] : memref<1x128xf32, #tpu.memory_space<vmem>>, vector<1x128xf32>
    %13 = vector.broadcast %12 : vector<1x128xf32> to vector<2x128xf32>
    %14 = arith.addf %11, %13 : vector<2x128xf32>
    %cst_11 = arith.constant 2.000000e-01 : f32
    %15 = vector.broadcast %cst_11 : f32 to vector<2x128xf32>
    %16 = arith.mulf %15, %14 : vector<2x128xf32>
    %17 = arith.maximumf %14, %16 : vector<2x128xf32>
    %18 = arith.truncf %17 : vector<2x128xf32> to vector<2x128xbf16>
    %c0_12 = arith.constant 0 : index
    %c0_13 = arith.constant 0 : index
    %19 = vector.load %arg6[%c0_12, %c0_13] : memref<128x16xbf16, #tpu.memory_space<vmem>>, vector<128x16xbf16>
    %cst_14 = arith.constant dense<0.000000e+00> : vector<2x16xf32>
    %20 = tpu.matmul %18, %19, %cst_14 {dimension_numbers = #tpu.dot_dimension_numbers<[1], [0], [0], [1], [0, 0, 1, 1], [], []>} : vector<2x128xbf16>, vector<128x16xbf16>, vector<2x16xf32> -> vector<2x16xf32>
    %c0_15 = arith.constant 0 : index
    %c0_16 = arith.constant 0 : index
    %21 = vector.load %arg7[%c0_15, %c0_16] : memref<1x16xf32, #tpu.memory_space<vmem>>, vector<1x16xf32>
    %22 = vector.broadcast %21 : vector<1x16xf32> to vector<2x16xf32>
    %23 = arith.addf %20, %22 : vector<2x16xf32>
    %cst_17 = arith.constant 2.000000e-01 : f32
    %24 = vector.broadcast %cst_17 : f32 to vector<2x16xf32>
    %25 = arith.mulf %24, %23 : vector<2x16xf32>
    %26 = arith.maximumf %23, %25 : vector<2x16xf32>
    %c0_18 = arith.constant 0 : index
    %c0_19 = arith.constant 0 : index
    %27 = vector.load %arg8[%c0_18, %c0_19] : memref<2x16xf32, #tpu.memory_space<vmem>>, vector<2x16xf32>
    tpu.vector_store %arg8[%c0_18, %c0_19], %26 {strides = array<i32>} : memref<2x16xf32, #tpu.memory_space<vmem>>, vector<2x16xf32>,
    return
  }
  func.func @transform_0(%arg0: i32) -> (i32, i32) {
    %c0_i32 = arith.constant 0 : i32
    %c0_i32_0 = arith.constant 0 : i32
    return %arg0, %c0_i32 : i32, i32
  }
  func.func @transform_1(%arg0: i32) -> (i32, i32) {
    %c0_i32 = arith.constant 0 : i32
    %c0_i32_0 = arith.constant 0 : i32
    %c0_i32_1 = arith.constant 0 : i32
    return %c0_i32, %c0_i32_0 : i32, i32
  }
  func.func @transform_2(%arg0: i32) -> (i32, i32) {
    %c0_i32 = arith.constant 0 : i32
    %c0_i32_0 = arith.constant 0 : i32
    %c0_i32_1 = arith.constant 0 : i32
    return %c0_i32, %c0_i32_0 : i32, i32
  }
  func.func @transform_3(%arg0: i32) -> (i32, i32) {
    %c0_i32 = arith.constant 0 : i32
    %c0_i32_0 = arith.constant 0 : i32
    %c0_i32_1 = arith.constant 0 : i32
    return %c0_i32, %c0_i32_0 : i32, i32
  }
  func.func @transform_4(%arg0: i32) -> (i32, i32) {
    %c0_i32 = arith.constant 0 : i32
    %c0_i32_0 = arith.constant 0 : i32
    %c0_i32_1 = arith.constant 0 : i32
    return %c0_i32, %c0_i32_0 : i32, i32
  }
  func.func @transform_5(%arg0: i32) -> (i32, i32) {
    %c0_i32 = arith.constant 0 : i32
    %c0_i32_0 = arith.constant 0 : i32
    %c0_i32_1 = arith.constant 0 : i32
    return %c0_i32, %c0_i32_0 : i32, i32
  }
  func.func @transform_6(%arg0: i32) -> (i32, i32) {
    %c0_i32 = arith.constant 0 : i32
    %c0_i32_0 = arith.constant 0 : i32
    %c0_i32_1 = arith.constant 0 : i32
    return %c0_i32, %c0_i32_0 : i32, i32
  }
  func.func @transform_7(%arg0: i32) -> (i32, i32) {
    %c0_i32 = arith.constant 0 : i32
    %c0_i32_0 = arith.constant 0 : i32
    return %arg0, %c0_i32 : i32, i32
  }
}

</mosaic_0001>

<bundles_post_ra>
// kernel: tpu_custom_call.1
= control target key start
LH: loop header
LB: loop body
LE: loop exit
PB: predicated region body
PF: predicated region fallthrough
CT: control target
= control target key end

     0   :  { %vm41_vm0 = vcmask 1043456   ;;  %vm37_vm1 = vcmask 64512   ;;  %v458_v1 = vmov 0.0   ;;  %vm459_vm2 = vmmov 0   ;;  %s587_s0 = inlined_call_operand.vmem [shape: bf16[2,8], index: 0, kind: input, shape index: {}]   ;;  %s588_s1 = inlined_call_operand.vmem [shape: bf16[8,128], index: 1, kind: input, shape index: {}]   ;;  %s589_s2 = inlined_call_operand.vmem [shape: f32[1,128], index: 2, kind: input, shape index: {}]   ;;  %s590_s3 = inlined_call_operand.vmem [shape: bf16[128,128], index: 3, kind: input, shape index: {}]   ;;  %s591_s4 = inlined_call_operand.vmem [shape: f32[1,128], index: 4, kind: input, shape index: {}]   ;;  %s592_s5 = inlined_call_operand.vmem [shape: bf16[128,16], index: 5, kind: input, shape index: {}]   ;;  %s593_s6 = inlined_call_operand.vmem [shape: f32[1,16], index: 6, kind: input, shape index: {}]   ;;  %s594_s7 = inlined_call_operand.hbm [shape: f32[2,16], index: 7, kind: output, shape index: {}]  }
   0x1   :  { %v29_v0 = vld [vmem:[%s588_s1] sm:$0xf]  ;;  %371 = vmatprep.subr.bf16.mxu0 %v458_v1  ;;  %373 = vmatprep.mubr.msk.bf16.mxu0 %vm459_vm2, %v458_v1  ;;  %v420_v4 = vld [vmem:[%s590_s3 + $0x38] sm:$0xff]   ;;  %v421_v5 = vld [vmem:[%s590_s3 + $0x30] sm:$0xff]  }
   0x2   :  { %v43_v2 = vsel %vm41_vm0, %v29_v0, 0  ;;  %v28_v3 = vld [vmem:[%s587_s0] sm:$0x1]  ;;  %377 = vmatprep.subr.bf16.mxu1 %v458_v1  ;;  %393 = vmatprep.mubr.msk.bf16.mxu1 %vm459_vm2, %v458_v1  ;;  %v422_v6 = vld [vmem:[%s590_s3 + $0x28] sm:$0xff]  }
   0x3   :  { %372 = vmatpush3.bf16.msra.mxu0 %v43_v2  ;;  %378 = vmatpush3.bf16.msra.mxu1 %v420_v4  ;;  %v423_v7 = vld [vmem:[%s590_s3 + $0x20] sm:$0xff]  }
   0x4   :  { %379 = vmatprep.subr.bf16.mxu1 %v458_v1  ;;  %397 = vmatprep.subr.bf16.mxu0 %v458_v1 }
   0x6   :  { %374 = vmatmul.mubr.msk.bf16.vlgmr.msra.gmra.mxu0 %vm37_vm1, %v28_v3 }
   0x7   :  { %413 = vmatprep.mubr.msk.bf16.mxu0 %vm459_vm2, %v458_v1  ;;  %380 = vmatpush3.bf16.msra.mxu1 %v421_v5 }
   0x8   :  { %381 = vmatprep.subr.bf16.mxu1 %v458_v1 }
   0xb   :  { %382 = vmatpush3.bf16.msra.mxu1 %v422_v6 }
   0xc   :  { %383 = vmatprep.subr.bf16.mxu1 %v458_v1 }
   0xd   :  { %12 = vsyncpa [#allocation3], 0  ;;  %v424_v8 = vld [vmem:[%s590_s3 + $0x18] sm:$0xff]   ;;  %v425_v9 = vld [vmem:[%s590_s3 + $0x10] sm:$0xff]   ;;  %vm315_vm3 = vcmask 123904  }
   0xe   :  { %v426_v10 = vld [vmem:[%s590_s3 + $0x8] sm:$0xff]   ;;  %v427_v11 = vld [vmem:[%s590_s3] sm:$0xff]   ;;  %v428_v12 = vld [vmem:[%s592_s5 + $0x38] sm:$0xff]  }
   0xf   :  { %384 = vmatpush3.bf16.msra.mxu1 %v423_v7  ;;  %398 = vmatpush3.bf16.msra.mxu0 %v428_v12  ;;  %v429_v13 = vld [vmem:[%s592_s5 + $0x30] sm:$0xff]   ;;  %v430_v14 = vld [vmem:[%s592_s5 + $0x28] sm:$0xff]   ;;  %v431_v15 = vld [vmem:[%s592_s5 + $0x20] sm:$0xff]  }
  0x10   :  { %385 = vmatprep.subr.bf16.mxu1 %v458_v1  ;;  %399 = vmatprep.subr.bf16.mxu0 %v458_v1  ;;  %v432_v16 = vld [vmem:[%s592_s5 + $0x18] sm:$0xff]   ;;  %v433_v17 = vld [vmem:[%s592_s5 + $0x10] sm:$0xff]   ;;  %v331_v18 = vld [vmem:[%s589_s2] ss:$0 sm:$0xff] }
  0x11   :  { %v434_v27 = vld [vmem:[%s592_s5 + $0x8] sm:$0xff]   ;;  %v435_v28 = vld [vmem:[%s592_s5] sm:$0xff]   ;;  %s460_s5 = smov [#allocation2]  }
  0x12   :  { %v333_v29 = vld [vmem:[%s591_s4] ss:$0 sm:$0xff]  ;;  %s323_s14 = sshll.u32 %s460_s5, 4  ;;  %s324_s14 = int_to_ptr.vmem [resolvable:$true] %s323_s14 }
  0x13   :  { %386 = vmatpush3.bf16.msra.mxu1 %v424_v8  ;;  %400 = vmatpush3.bf16.msra.mxu0 %v429_v13  ;;  %v342_v38 = vld [vmem:[%s593_s6] ss:$0 sm:$0xff]  ;;  %s436_s4 = scalar_lea.vmem %s324_s14, 32  ;;  %p441_p1 = scmp.lt.s32.totalorder %s324_s14, %s324_s14 }
  0x14   :  { %387 = vmatprep.subr.bf16.mxu1 %v458_v1  ;;  %401 = vmatprep.subr.bf16.mxu0 %v458_v1  ;;  %p437_p0 = scmp.ne.s32.totalorder %s324_s14, %s436_s4  ;;  %p442_p2 = scmp.lt.s32.totalorder %s436_s4, %s436_s4 }
  0x16   :  { %p443_p3 = por %p442_p2, %p441_p1 }
  0x17   :  { %388 = vmatpush3.bf16.msra.mxu1 %v425_v9  ;;  %402 = vmatpush3.bf16.msra.mxu0 %v430_v14 }
  0x18   :  { %389 = vmatprep.subr.bf16.mxu1 %v458_v1  ;;  %403 = vmatprep.subr.bf16.mxu0 %v458_v1  ;;  %p444_p4 = pnand %p443_p3, %p437_p0 }
  0x1b   :  { %390 = vmatpush3.bf16.msra.mxu1 %v426_v10  ;;  %404 = vmatpush3.bf16.msra.mxu0 %v431_v15 }
  0x1c   :  { %391 = vmatprep.subr.bf16.mxu1 %v458_v1  ;;  %405 = vmatprep.subr.bf16.mxu0 %v458_v1 }
  0x1f   :  { %392 = vmatpush3.bf16.msra.mxu1 %v427_v11  ;;  %406 = vmatpush3.bf16.msra.mxu0 %v432_v16 }
  0x20   :  { %407 = vmatprep.subr.bf16.mxu0 %v458_v1 }
  0x23   :  { %408 = vmatpush3.bf16.msra.mxu0 %v433_v17 }
  0x24   :  { %409 = vmatprep.subr.bf16.mxu0 %v458_v1 }
  0x27   :  { %410 = vmatpush3.bf16.msra.mxu0 %v434_v27 }
  0x28   :  { %411 = vmatprep.subr.bf16.mxu0 %v458_v1 }
  0x2b   :  { %412 = vmatpush3.bf16.msra.mxu0 %v435_v28 }
  0xc6   :  { %v79_v19 = vpop.f32.mrf.mxu0 }
  0xc7   :  { %v80_v20 = vadd.f32 %v331_v18, %v79_v19 }
  0xc8   :  { %v375_v21 = vpop.f32.mrf.mxu0 }
  0xc9   :  { %v85_v22 = vmul.f32 0.2, %v80_v20 }
  0xca   :  { %v82_v23 = vpop.f32.mrf.mxu0 }
  0xcb   :  { %v86_v24 = vmax.f32 %v80_v20, %v85_v22 }
  0xcc   :  { %v376_v25 = vpop.f32.mrf.mxu0 }
  0xcd   :  { %v87_v26 = vpack.c.bf16 %v86_v24, %v86_v24 }
  0xcf   :  { %394 = vmatmul.mubr.bf16.vlgmr.msra.gmra.mxu1 %v87_v26 }
 0x18f   :  { %v193_v30 = vpop.f32.mrf.mxu1 }
 0x190   :  { %v194_v31 = vadd.f32 %v333_v29, %v193_v30 }
 0x191   :  { %v395_v32 = vpop.f32.mrf.mxu1 }
 0x192   :  { %v199_v33 = vmul.f32 0.2, %v194_v31 }
 0x193   :  { %v196_v34 = vpop.f32.mrf.mxu1 }
 0x194   :  { %v200_v35 = vmax.f32 %v194_v31, %v199_v33 }
 0x195   :  { %v396_v36 = vpop.f32.mrf.mxu1 }
 0x196   :  { %v201_v37 = vpack.c.bf16 %v200_v35, %v200_v35 }
 0x198   :  { %414 = vmatmul.mubr.bf16.vlgmr.msra.gmra.mxu0 %v201_v37 }
 0x258   :  { %v307_v39 = vpop.f32.mrf.mxu0 }
 0x259   :  { %v308_v40 = vadd.f32 %v342_v38, %v307_v39 }
 0x25a   :  { %v415_v41 = vpop.f32.mrf.mxu0 }
 0x25b   :  { %v313_v42 = vmul.f32 0.2, %v308_v40 }
 0x25c   :  { %v310_v43 = vpop.f32.mrf.mxu0 }
 0x25d   :  { %v314_v44 = vmax.f32 %v308_v40, %v313_v42 }
 0x25e   :  { %v416_v45 = vpop.f32.mrf.mxu0 }
 0x25f   :  { %316 = vst.msk [vmem:[#allocation2] sm:$0x3] %vm315_vm3, %v314_v44 }
 0x260   :  { %447 = shalt.err (!%p444_p4)
}
 0x261   :  { %326 = dma.vmem_to_hbm [thread:$0]  %s324_s14, 32, %s594_s7, [#allocation3]  }
 0x262   :  { %456 = dma.done.wait [#allocation3], 32  }
 0x263   :  { %457 = vsyncadd [#allocation3], 4294967264 }
 0x264   :  { %330 = vsyncpa [#allocation3], 1 }

</bundles_post_ra>
